<compile_context>
chip_gen: v7x
topology: tpu7x:2x2x1
jax: 0.10.0
libtpu: 0.0.40
codegen_flags: <defaults>
</compile_context>

<pallas_src>
import math

import numpy as np
import jax
import jax.numpy as jnp
from jax import lax
from jax.experimental import pallas as pl
from jax.experimental.pallas import tpu as pltpu


# ----------------------------------------------------------------------------
# Pure-JAX reference (also the small / ragged-shape fallback path).
# ----------------------------------------------------------------------------
def _weighted_l1_loss_ref(inp, target, code_weights=None, weights=None):
    out_dtype = jnp.promote_types(inp.dtype, target.dtype)
    x = inp.astype(out_dtype)
    t = target.astype(out_dtype)
    t = jnp.where(jnp.isnan(t), x, t)
    diff = x - t
    if code_weights is not None:
        cw = jnp.asarray(code_weights, dtype=out_dtype).reshape(1, 1, -1)
        diff = diff * cw
    loss = jnp.abs(diff)
    if weights is not None:
        loss = loss * weights.astype(out_dtype)[..., None]
    return loss


# ----------------------------------------------------------------------------
# Kernel factory: specializes on which optional operands are present.
# ----------------------------------------------------------------------------
def _make_kernel(has_cw: bool, has_w: bool, compute_dtype):
    def kernel(*refs):
        if has_cw and has_w:
            x_ref, t_ref, cw_ref, w_ref, e_ref, o_ref = refs
        elif has_cw:
            x_ref, t_ref, cw_ref, o_ref = refs
        elif has_w:
            x_ref, t_ref, w_ref, e_ref, o_ref = refs
        else:
            x_ref, t_ref, o_ref = refs

        # In-kernel dtype promotion (VPU casts are free here).
        x = x_ref[...].astype(compute_dtype)           # (tR, L) lane-dense
        t = t_ref[...].astype(compute_dtype)           # (tR, L)
        t = jnp.where(jnp.isnan(t), x, t)               # NaN targets -> zero diff
        diff = x - t
        if has_cw:
            diff = diff * cw_ref[...].astype(compute_dtype)   # (1, L) broadcast
        loss = jnp.abs(diff)
        if has_w:
            # Expand per-anchor weights (tR, k) -> per-element lanes (tR, L)
            # with a constant 0/1 matrix on the otherwise idle MXU.
            # HIGHEST precision => exact f32 (bf16x3) reconstruction.
            w_lane = jnp.dot(
                w_ref[...].astype(jnp.float32), e_ref[...],
                preferred_element_type=jnp.float32,
                precision=lax.Precision.HIGHEST)
            loss = loss * w_lane.astype(compute_dtype)
        o_ref[...] = loss.astype(o_ref.dtype)

    return kernel


# ----------------------------------------------------------------------------
# Wrapper
# ----------------------------------------------------------------------------
def weighted_l1_loss(inp, target, code_weights=None, weights=None, *,
                     block_rows=None,
                     per_stream_tile_bytes=4 << 20,
                     vmem_limit_bytes=48 << 20,
                     min_pallas_elements=1 << 18):
    """inp, target: (B, A, C); code_weights: (C,) or None; weights: (B, A) or None."""
    inp = jnp.asarray(inp)
    target = jnp.asarray(target)
    assert inp.ndim == 3 and inp.shape == target.shape
    B, A, C = inp.shape
    out_dtype = jnp.promote_types(inp.dtype, target.dtype)

    has_w = weights is not None
    if has_w:
        weights = jnp.asarray(weights)
        assert weights.shape[0] == B and weights.shape[1] == A
    has_cw = code_weights is not None

    # Lane-dense repack geometry: fold k anchors per row so the lane width is a
    # multiple of 128 (free reshape of the contiguous buffer when A % k == 0).
    k = math.lcm(C, 128) // C
    L = k * C

    # Fallback: tiny problems, ragged anchor counts (would need pad+slice HBM
    # copies that cost more than the kernel itself), or pathologically wide L.
    if (B == 0 or A == 0 or C == 0
            or B * A * C < min_pallas_elements
            or A % k != 0
            or L > 4096):
        return _weighted_l1_loss_ref(inp, target, code_weights, weights)

    R0 = A // k
    M = B * R0                              # flat row count (single grid axis)

    x2 = inp.reshape(M, L)                  # free reshapes (contiguous buffer)
    t2 = target.reshape(M, L)

    x_isz = jnp.dtype(inp.dtype).itemsize
    t_isz = jnp.dtype(target.dtype).itemsize
    o_isz = jnp.dtype(out_dtype).itemsize
    w_isz = jnp.dtype(weights.dtype).itemsize if has_w else 0

    # ---- tile sizing: budget-derived rows, VMEM-safe on v5e/v6e/v7x ----------
    if block_rows is not None:
        tR = max(8, (int(block_rows) // 8) * 8)
    else:
        tR = per_stream_tile_bytes // (L * max(x_isz, t_isz, o_isz))
        tR = max(16, (int(tR) // 16) * 16)

    def _working_set(tr):
        per_step = tr * (L * (x_isz + t_isz + o_isz) + k * w_isz)
        consts = (L * o_isz if has_cw else 0) + (k * L * 4 if has_w else 0)
        return 2 * per_step + 2 * consts            # double-buffered

    while tR > 16 and _working_set(tR) > int(0.75 * vmem_limit_bytes):
        tR = max(16, ((tR // 2) // 16) * 16)

    if tR >= M:
        tR = M                                       # single full block
    n_blocks = -(-M // tR)                           # cdiv; last block masked

    # ---- operands & specs -----------------------------------------------------
    operands = [x2, t2]
    in_specs = [
        pl.BlockSpec((tR, L), lambda r: (r, 0)),     # input
        pl.BlockSpec((tR, L), lambda r: (r, 0)),     # target
    ]

    if has_cw:
        cw = jnp.asarray(code_weights, dtype=out_dtype).reshape(C)
        cw_lane = jnp.tile(cw, k).reshape(1, L)      # full-lane vreg constant
        operands.append(cw_lane)
        in_specs.append(pl.BlockSpec((1, L), lambda r: (0, 0)))

    if has_w:
        w2 = weights.reshape(M, k)                   # compact stream (B*A floats)
        # E[i, j] = 1 if j // C == i else 0  (per-anchor -> per-code expansion)
        expand = jnp.asarray(np.repeat(np.eye(k, dtype=np.float32), C, axis=1))
        operands += [w2, expand]
        in_specs += [
            pl.BlockSpec((tR, k), lambda r: (r, 0)),
            pl.BlockSpec((k, L), lambda r: (0, 0)),
        ]

    out_spec = pl.BlockSpec((tR, L), lambda r: (r, 0))

    bytes_accessed = (M * L * (x_isz + t_isz + o_isz)
                      + (M * k * w_isz if has_w else 0)
                      + (L * o_isz if has_cw else 0)
                      + (k * L * 4 if has_w else 0))
    flops = 2 * M * k * L if has_w else 0

    out2 = pl.pallas_call(
        _make_kernel(has_cw, has_w, out_dtype),
        out_shape=jax.ShapeDtypeStruct((M, L), out_dtype),
        grid_spec=pltpu.PrefetchScalarGridSpec(
            num_scalar_prefetch=0,
            grid=(n_blocks,),
            in_specs=in_specs,
            out_specs=out_spec,
        ),
        compiler_params=pltpu.CompilerParams(
            dimension_semantics=("parallel",),
            vmem_limit_bytes=int(vmem_limit_bytes)),
        cost_estimate=pl.CostEstimate(
            flops=int(flops), transcendentals=0,
            bytes_accessed=int(bytes_accessed)),
    )(*operands)

    return out2.reshape(B, A, C)                     # free reshape back


# ----------------------------------------------------------------------------
# Demo / correctness checks
# ----------------------------------------------------------------------------
if __name__ == "__main__":
    key = jax.random.PRNGKey(0)
    # C=8 -> k=16, L=128.  A is a multiple of k so the Pallas fast path (pure
    # reshape, no pad / slice copies) is taken.  Shapes kept modest.
    B, A, C = 2, 4224, 8

    k1, k2, k3 = jax.random.split(key, 3)
    inp = jax.random.normal(k1, (B, A, C), dtype=jnp.float32)
    target = jax.random.normal(k2, (B, A, C), dtype=jnp.float32)
    # Inject NaNs to exercise the isnan fallback (including near the tail).
    target = target.at[0, 3, 2].set(jnp.nan)
    target = target.at[1, A - 1, 0].set(jnp.nan)
    weights = jax.random.uniform(k3, (B, A), dtype=jnp.float32)
    code_weights = [1.0, 1.0, 1.0, 1.0, 1.0, 1.0, 0.5, 0.5]

    # Full-featured path via Pallas; small block_rows forces several grid steps
    # including a masked partial final block (M = 528 rows, 128-row blocks).
    out = weighted_l1_loss(inp, target, code_weights=code_weights,
                           weights=weights, block_rows=128,
                           min_pallas_elements=0)
    out = jax.block_until_ready(out)
    ref = _weighted_l1_loss_ref(inp, target, code_weights, weights)
    assert out.shape == (B, A, C)
    assert out.dtype == ref.dtype
    assert jnp.allclose(out, ref, atol=1e-6, rtol=1e-6)

    # No-optional-operands specialization via Pallas, auto (budget-derived) tile.
    out2 = weighted_l1_loss(inp, target, min_pallas_elements=0)
    out2 = jax.block_until_ready(out2)
    ref2 = _weighted_l1_loss_ref(inp, target)
    assert jnp.allclose(out2, ref2, atol=1e-6, rtol=1e-6)

    # Ragged anchor count (A % k != 0) routes to the XLA-fusion fallback.
    ri, rt, rw = inp[:, :4229 - 4096, :], target[:, :133, :], weights[:, :133]
    out3 = weighted_l1_loss(ri, rt, code_weights=code_weights, weights=rw,
                            min_pallas_elements=0)
    out3 = jax.block_until_ready(out3)
    ref3 = _weighted_l1_loss_ref(ri, rt, code_weights, rw)
    assert jnp.allclose(out3, ref3, atol=1e-6, rtol=1e-6)

    print("KERNEL_OK")
</pallas_src>

<mosaic_0001>
module attributes {stable_mosaic.version = 11 : i64} {
  func.func @kernel(%arg0: i32, %arg1: memref<128x128xf32, #tpu.memory_space<vmem>>, %arg2: memref<128x128xf32, #tpu.memory_space<vmem>>, %arg3: memref<1x128xf32, #tpu.memory_space<vmem>>, %arg4: memref<128x16xf32, #tpu.memory_space<vmem>>, %arg5: memref<16x128xf32, #tpu.memory_space<vmem>>, %arg6: memref<128x128xf32, #tpu.memory_space<vmem>>) attributes {dimension_semantics = [#tpu.dimension_semantics<parallel>], iteration_bounds = array<i64: 5>, scalar_prefetch = 0 : i64, scratch_operands = 0 : i64, tpu.core_type = #tpu.core_type<tc>, window_params = [{transform_indices = @transform_0, window_bounds = array<i64: 128, 128>}, {transform_indices = @transform_1, window_bounds = array<i64: 128, 128>}, {pipeline_mode = #tpu.pipeline_mode<synchronous>, transform_indices = @transform_2, window_bounds = array<i64: 1, 128>}, {transform_indices = @transform_3, window_bounds = array<i64: 128, 16>}, {pipeline_mode = #tpu.pipeline_mode<synchronous>, transform_indices = @transform_4, window_bounds = array<i64: 16, 128>}, {transform_indices = @transform_5, window_bounds = array<i64: 128, 128>}]} {
    %c0 = arith.constant 0 : index
    %c0_0 = arith.constant 0 : index
    %0 = vector.load %arg1[%c0, %c0_0] : memref<128x128xf32, #tpu.memory_space<vmem>>, vector<128x128xf32>
    %c0_1 = arith.constant 0 : index
    %c0_2 = arith.constant 0 : index
    %1 = vector.load %arg2[%c0_1, %c0_2] : memref<128x128xf32, #tpu.memory_space<vmem>>, vector<128x128xf32>
    %2 = arith.cmpf one, %1, %1 : vector<128x128xf32>
    %3 = arith.select %2, %0, %1 : vector<128x128xi1>, vector<128x128xf32>
    %4 = arith.subf %0, %3 : vector<128x128xf32>
    %c0_3 = arith.constant 0 : index
    %c0_4 = arith.constant 0 : index
    %5 = vector.load %arg3[%c0_3, %c0_4] : memref<1x128xf32, #tpu.memory_space<vmem>>, vector<1x128xf32>
    %6 = vector.broadcast %5 : vector<1x128xf32> to vector<128x128xf32>
    %7 = arith.mulf %4, %6 : vector<128x128xf32>
    %8 = math.absf %7 : vector<128x128xf32>
    %c0_5 = arith.constant 0 : index
    %c0_6 = arith.constant 0 : index
    %9 = vector.load %arg4[%c0_5, %c0_6] : memref<128x16xf32, #tpu.memory_space<vmem>>, vector<128x16xf32>
    %c0_7 = arith.constant 0 : index
    %c0_8 = arith.constant 0 : index
    %10 = vector.load %arg5[%c0_7, %c0_8] : memref<16x128xf32, #tpu.memory_space<vmem>>, vector<16x128xf32>
    %cst = arith.constant dense<0.000000e+00> : vector<128x128xf32>
    %11 = tpu.matmul %9, %10, %cst {dimension_numbers = #tpu.dot_dimension_numbers<[1], [0], [0], [1], [0, 0, 1, 1], [], []>, precision = #tpu.contract_precision<fp32>} : vector<128x16xf32>, vector<16x128xf32>, vector<128x128xf32> -> vector<128x128xf32>
    %12 = arith.mulf %8, %11 : vector<128x128xf32>
    %c0_9 = arith.constant 0 : index
    %c0_10 = arith.constant 0 : index
    %13 = vector.load %arg6[%c0_9, %c0_10] : memref<128x128xf32, #tpu.memory_space<vmem>>, vector<128x128xf32>
    tpu.vector_store %arg6[%c0_9, %c0_10], %12 {strides = array<i32>} : memref<128x128xf32, #tpu.memory_space<vmem>>, vector<128x128xf32>,
    return
  }
  func.func @transform_0(%arg0: i32) -> (i32, i32) {
    %c0_i32 = arith.constant 0 : i32
    %c0_i32_0 = arith.constant 0 : i32
    return %arg0, %c0_i32 : i32, i32
  }
  func.func @transform_1(%arg0: i32) -> (i32, i32) {
    %c0_i32 = arith.constant 0 : i32
    %c0_i32_0 = arith.constant 0 : i32
    return %arg0, %c0_i32 : i32, i32
  }
  func.func @transform_2(%arg0: i32) -> (i32, i32) {
    %c0_i32 = arith.constant 0 : i32
    %c0_i32_0 = arith.constant 0 : i32
    %c0_i32_1 = arith.constant 0 : i32
    return %c0_i32, %c0_i32_0 : i32, i32
  }
  func.func @transform_3(%arg0: i32) -> (i32, i32) {
    %c0_i32 = arith.constant 0 : i32
    %c0_i32_0 = arith.constant 0 : i32
    return %arg0, %c0_i32 : i32, i32
  }
  func.func @transform_4(%arg0: i32) -> (i32, i32) {
    %c0_i32 = arith.constant 0 : i32
    %c0_i32_0 = arith.constant 0 : i32
    %c0_i32_1 = arith.constant 0 : i32
    return %c0_i32, %c0_i32_0 : i32, i32
  }
  func.func @transform_5(%arg0: i32) -> (i32, i32) {
    %c0_i32 = arith.constant 0 : i32
    %c0_i32_0 = arith.constant 0 : i32
    return %arg0, %c0_i32 : i32, i32
  }
}

</mosaic_0001>

<bundles_post_ra>
// kernel: tpu_custom_call.1
= control target key start
LH: loop header
LB: loop body
LE: loop exit
PB: predicated region body
PF: predicated region fallthrough
CT: control target
= control target key end

     0   :  { %10 = vsyncpa [#allocation3], 0  ;;  %s2869_s0 = inlined_call_operand.vmem [shape: f32[528,128], index: 0, kind: input, shape index: {}]   ;;  %s2870_s1 = inlined_call_operand.hbm [shape: f32[528,128], index: 1, kind: input, shape index: {}]   ;;  %s2871_s2 = inlined_call_operand.vmem [shape: f32[1,128], index: 2, kind: input, shape index: {}]   ;;  %s2872_s3 = inlined_call_operand.vmem [shape: f32[528,16], index: 3, kind: input, shape index: {}]   ;;  %s2873_s4 = inlined_call_operand.vmem [shape: f32[16,128], index: 4, kind: input, shape index: {}]   ;;  %s2874_s5 = inlined_call_operand.hbm [shape: f32[528,128], index: 5, kind: output, shape index: {}]  }
   0x1   :  { %12 = vsyncpa [#allocation3 + $0x1], 0 }
   0x2   :  { %13 = vsyncpa [#allocation4], 0 }
   0x3   :  { %15 = vsyncpa [#allocation4 + $0x1], 0  ;;  %s2366_s18 = smov 0   ;;  %s2368_s19 = smov 0  }
   0x4   :  { %s2370_s20 = smov 0   ;;  %s2372_s21 = smov 0  }
   0x5 LB: > { %s2387_s22 = sadd.s32 4294967295, %s2328_s21   ;;  %s1782_s23 = sadd.s32 4294967294, %s2328_s21   ;;  %s2328_s21 = sphi %s2372_s21, %s2882_s21   ;;  %s2324_s20 = sphi %s2370_s20, %s2881_s20   ;;  %s2320_s19 = sphi %s2368_s19, %s2880_s19   ;;  %s2316_s18 = sphi %s2366_s18, %s2879_s18  }
   0x6   : > { %s2391_s24 = sadd.s32 1, %s2328_s21   ;;  %s54_s25 = sadd.s32 1, %s2324_s20 }
   0x7   : > { %s51_s26 = ssub.s32 %s2328_s21, %s2391_s24  ;;  %p61_p0 = scmp.ne.s32.totalorder %s2324_s20, %s2320_s19 }
   0x8   : > { %p52_p1 = scmp.eq.s32.totalorder %s51_s26, 0  ;;  %p62_p2 = scmp.eq.s32.totalorder %s2328_s21, 0 }
   0x9   : > { %p67_p3 = scmp.ne.s32.totalorder %s2320_s19, %s2316_s18  ;;  %p68_p4 = scmp.eq.s32.totalorder %s2387_s22, 0 }
   0xa   : > { %s2403_s27 = scalar_select %p52_p1, %s2324_s20, %s54_s25  }
   0xb   : > { %p63_p5 = por %p62_p2, %p61_p0  ;;  %p2405_p6 = por %p68_p4, %p67_p3 }
   0xc   : > { %p159_p7 = scmp.eq.s32.totalorder %s2387_s22, 4  ;;  %p165_p8 = scmp.eq.s32.totalorder %s1782_s23, 4 }
   0xd   : > { %p1784_p11 = scmp.ge.s32.totalorder %s2328_s21, 5 }
   0xe   : > { %p2410_p9 = por %p159_p7, %p61_p0  ;;  %p2414_p10 = por %p165_p8, %p67_p3 }
   0xf   : > { %187 = sbr.rel (%p1784_p11) target bundleno = 57 (0x39), region = 24 }
  0x10   : > { %s2877_s30 = scalar_select %p2414_p10, 1, 0 }
  0x16   : > { %207 = sbr.rel (!%p63_p5) target bundleno = 57 (0x39), region = 32  ;;  %s208_s6 = sand.u32 (%p63_p5), 1, %s2324_s20  }
  0x17   : > { %s1786_s7 = sshll.u32 (%p63_p5), %s2328_s21, 4  ;;  %s1785_s8 = sshll.u32 (%p63_p5), %s208_s6, 7 }
  0x18   : > { %s214_s9 = ssub.s32 (%p63_p5), 66, %s1786_s7  ;;  %s2424_s12 = scalar_lea.sflag (%p63_p5), [#allocation3], %s208_s6 }
  0x19   : > { %p215_p12 = scmp.lt.s32.totalorder (%p63_p5), %s214_s9, 16  ;;  %s212_s13 = scalar_lea.vmem (%p63_p5), [#allocation2], %s1785_s8 }
  0x1d   : > { %s2884_s9 = smov (!%p215_p12, %s214_s9), 16 }
  0x1e   : > { %s2421_s10 = sshll.u32 %s2884_s9, 7 }
  0x1f   : > { %s219_s11 = ssub.s32 2048, %s2421_s10 }
  0x20   : > { %220 = vsyncadd %s2424_s12, %s219_s11  ;;  %p1788_p13 = scmp.ne.s32.totalorder %s2421_s10, 0  ;;  %s1809_s14 = sshll.u32 %s2328_s21, 11 }
  0x21   : > { %s2432_s17 = scalar_lea.hbm %s2870_s1, %s1809_s14  ;;  %s225_s23 = sshll.u32 %s212_s13, 4  ;;  %s2434_s23 = int_to_ptr.vmem [resolvable:$true] %s225_s23 }
  0x22   : > { %s2234_s25 = scalar_lea.hbm %s2432_s17, %s2421_s10  ;;  %s2238_s7 = scalar_lea.hbm %s2870_s1, 8448 }
  0x23   : > { %p2235_p0 = scmp.ne.s32.totalorder %s2432_s17, %s2234_s25  ;;  %p2239_p3 = scmp.lt.u32.totalorder %s2432_s17, %s2870_s1 }
  0x24   : > { %p2240_p4 = scmp.lt.u32.totalorder %s2238_s7, %s2234_s25  ;;  %p2242_p7 = scmp.lt.u32.totalorder %s2234_s25, %s2432_s17 }
  0x25   : > { %p2236_p1 = pnand %p2235_p0, %p1788_p13 }
  0x26   : > { %p2241_p5 = por %p2240_p4, %p2239_p3 }
  0x27   : > { %p2237_p2 = pneg %p2236_p1 }
  0x28   : > { %p2243_p8 = por %p2242_p7, %p2241_p5 }
  0x2a   : > { %p2244_p11 = pnand %p2243_p8, %p2237_p2 }
  0x2c   : > { %2247 = shalt.err (!%p2244_p11)
}
  0x2d   : > { %s2248_s11 = scalar_lea.vmem %s2434_s23, %s2421_s10  ;;  %s2330_s13 = smov [#allocation2]  }
  0x2e   : > { %p2249_p12 = scmp.ne.s32.totalorder %s2434_s23, %s2248_s11  ;;  %s2252_s14 = sshll.u32 %s2330_s13, 4  ;;  %s2253_s14 = int_to_ptr.vmem [resolvable:$false] %s2252_s14 }
  0x2f   : > { %s2254_s15 = scalar_lea.vmem %s2253_s14, 4096  ;;  %p2255_p10 = scmp.lt.s32.totalorder %s2434_s23, %s2253_s14 }
  0x30   : > { %p2250_p0 = pnand %p2249_p12, %p1788_p13  ;;  %p2256_p3 = scmp.lt.s32.totalorder %s2254_s15, %s2248_s11 }
  0x32   : > { %p2251_p1 = pneg %p2250_p0  ;;  %p2257_p4 = por %p2256_p3, %p2255_p10 }
  0x34   : > { %p2258_p5 = pnand %p2257_p4, %p2251_p1 }
  0x36   : > { %2261 = shalt.err (!%p2258_p5)
}
  0x37   : > { %s2331_s16 = smov 128   ;;  %s2332_s25 = smov 8  }
  0x38   : > { %231 = dma.hbm_to_vmem [thread:$0]  (%p1788_p13), %s2432_s17, %s2421_s10, %s2434_s23, %s2424_s12, %s2331_s16, %s2331_s16, %s2332_s25  }
  0x39 PF: > { %p1792_p2 = scmp.ge.s32.totalorder %s2328_s21, 1  ;;  %p250_p7 = scmp.lt.s32.totalorder %s2328_s21, 6 }
  0x3b   : > { %p251_p8 = pnand %p1792_p2, %p250_p7 }
  0x3c   : > { %s2464_s26 = sand.u32 (!%p251_p8), 1, %s2320_s19  }
  0x3d   : > { %254 = sbr.rel (%p251_p8) target bundleno = 427 (0x1ab), region = 40  ;;  %s1793_s6 = sshll.u32 (!%p251_p8), %s2464_s26, 7 }
  0x3e   : > { %s257_s7 = scalar_lea.sflag (!%p251_p8), [#allocation3], %s2464_s26  ;;  %s2470_s8 = scalar_lea.vmem (!%p251_p8), [#allocation2], %s1793_s6 }
  0x44   : > { %2307 = dma.done.wait (%p2405_p6), %s257_s7, 2048  }
  0x45   : > { %2309 = vsyncadd (%p2405_p6), %s257_s7, 4294965248  ;;  %s2477_s10 = sshll.u32 %s2387_s22, 4  ;;  %vm480_vm0 = vcmask 130048   ;;  %v478_v0 = vld [vmem:[%s2873_s4] sm:$0xff]  ;;  %v479_v1 = vld [vmem:[%s2873_s4 + $0x8] sm:$0xff]  ;;  %s2765_s23 = scalar_lea.vmem [#allocation5], %s1793_s6 }
  0x46   : > { %p310_p10 = scmp.lt.s32.totalorder %s2477_s10, 65  ;;  %v530_v3 = vand.u32 4294901760, %v478_v0  ;;  %v533_v4 = vand.u32 4294901760, %v479_v1  ;;  %s1666_s6 = scalar_lea.sflag [#allocation4], %s2464_s26 }
  0x48   : > { %s2481_s12 = scalar_select %p310_p10, %s2477_s10, 65  ;;  %v2508_v14 = vpack.c.bf16 %v533_v4, %v530_v3  ;;  %v2514_v17 = vsub.f32 %v478_v0, %v530_v3  ;;  %v2520_v20 = vsub.f32 %v479_v1, %v533_v4 }
  0x4a   : > { %s1796_s17 = sshll.u32 %s2481_s12, 3  ;;  %2100 = vmatprep.subr.bf16.mxu0 %v2508_v14  ;;  %2088 = vmatprep.subr.bf16.mxu1 %v2508_v14  ;;  %v759_v25 = vand.u32 4294901760, %v2514_v17  ;;  %v766_v28 = vand.u32 4294901760, %v2520_v20 }
  0x4b   : > { %s2489_s11 = scalar_lea.vmem %s2872_s3, %s1796_s17  ;;  %2102 = vmatpush3.bf16.msra.mxu0 %v2508_v14  ;;  %2090 = vmatpush3.bf16.msra.mxu1 %v2508_v14  ;;  %s2728_s7 = scalar_lea.vmem %s2869_s0, %s1796_s17 }
  0x4c   : > { %v462_v2 = vld [vmem:[%s2489_s11] sm:$0xff]  ;;  %v463_v6 = vld [vmem:[%s2489_s11 + $0x8] sm:$0xff]  ;;  %v464_v7 = vld [vmem:[%s2489_s11 + $0x10] sm:$0xff]  ;;  %v760_v33 = vsub.f32 %v2514_v17, %v759_v25  ;;  %v767_v36 = vsub.f32 %v2520_v20, %v766_v28  ;;  %v2103_v38 = vpack.c.bf16 %v766_v28, %v759_v25 }
  0x4d   : > { %v482_v5 = vsel %vm480_vm0, %v462_v2, 0  ;;  %v465_v8 = vld [vmem:[%s2489_s11 + $0x18] sm:$0xff]  ;;  %v485_v10 = vsel %vm480_vm0, %v463_v6, 0  ;;  %v488_v11 = vsel %vm480_vm0, %v464_v7, 0  ;;  %v466_v13 = vld [vmem:[%s2489_s11 + $0x20] sm:$0xff]  ;;  %v467_v18 = vld [vmem:[%s2489_s11 + $0x28] sm:$0xff] }
  0x4e   : > { %v2502_v9 = vand.u32 4294901760, %v482_v5  ;;  %v491_v12 = vsel %vm480_vm0, %v465_v8, 0  ;;  %v2510_v15 = vand.u32 4294901760, %v485_v10  ;;  %v2512_v16 = vand.u32 4294901760, %v488_v11  ;;  %v468_v39 = vld [vmem:[%s2489_s11 + $0x30] sm:$0xff]  ;;  %2104 = vmatprep.subr.bf16.mxu0 %v2103_v38  ;;  %v469_v48 = vld [vmem:[%s2489_s11 + $0x38] sm:$0xff] }
  0x4f   : > { %v2522_v21 = vand.u32 4294901760, %v491_v12  ;;  %v494_v22 = vsel %vm480_vm0, %v466_v13, 0  ;;  %v497_v30 = vsel %vm480_vm0, %v467_v18, 0  ;;  %v761_v41 = vand.u32 4294901760, %v760_v33  ;;  %v470_v49 = vld [vmem:[%s2489_s11 + $0x40] sm:$0xff]  ;;  %v471_v50 = vld [vmem:[%s2489_s11 + $0x48] sm:$0xff] }
  0x50   : > { %v2518_v19 = vsub.f32 %v482_v5, %v2502_v9  ;;  %v2528_v23 = vsub.f32 %v485_v10, %v2510_v15  ;;  %v2531_v24 = vsub.f32 %v488_v11, %v2512_v16  ;;  %v2534_v26 = vand.u32 4294901760, %v494_v22  ;;  %v472_v59 = vld [vmem:[%s2489_s11 + $0x50] sm:$0xff]  ;;  %v473_v60 = vld [vmem:[%s2489_s11 + $0x58] sm:$0xff]  ;;  %v474_v61 = vld [vmem:[%s2489_s11 + $0x60] sm:$0xff] }
  0x51   : > { %v2541_v29 = vsub.f32 %v491_v12, %v2522_v21  ;;  %v768_v45 = vand.u32 4294901760, %v767_v36  ;;  %v2558_v47 = vand.u32 4294901760, %v497_v30  ;;  %v500_v54 = vsel %vm480_vm0, %v468_v39, 0 }
  0x52   : > { %v598_v27 = vand.u32 4294901760, %v2518_v19  ;;  %v608_v31 = vand.u32 4294901760, %v2528_v23  ;;  %v618_v32 = vand.u32 4294901760, %v2531_v24  ;;  %v2548_v34 = vsub.f32 %v494_v22, %v2534_v26 }
  0x53   : > { %v628_v37 = vand.u32 4294901760, %v2541_v29  ;;  %v2091_v55 = vpack.c.bf16 %v768_v45, %v761_v41  ;;  %v2566_v57 = vsub.f32 %v497_v30, %v2558_v47  ;;  %v2568_v58 = vand.u32 4294901760, %v500_v54  ;;  %v475_v30 = vld [vmem:[%s2489_s11 + $0x68] sm:$0xff] }
  0x54   : > { %2007 = vmatprep.mubr.f32.mxu0 %v598_v27  ;;  %v599_v35 = vsub.f32 %v2518_v19, %v598_v27  ;;  %v609_v40 = vsub.f32 %v2528_v23, %v608_v31  ;;  %v619_v42 = vsub.f32 %v2531_v24, %v618_v32  ;;  %v638_v43 = vand.u32 4294901760, %v2548_v34 }
  0x55   : > { %2008 = vmatmul.mubr.f32.vlgmr.msra.gmra.mrb[0].mxu0 %v608_v31  ;;  %v629_v46 = vsub.f32 %v2541_v29, %v628_v37  ;;  %v503_v63 = vsel %vm480_vm0, %v469_v48, 0  ;;  %v506_v0 = vsel %vm480_vm0, %v470_v49, 0  ;;  %v509_v1 = vsel %vm480_vm0, %v471_v50, 0  ;;  %2092 = vmatprep.subr.bf16.mxu1 %v2091_v55  ;;  %v477_v50 = vld [vmem:[%s2489_s11 + $0x78] sm:$0xff] }
  0x56   : > { %v600_v44 = vand.u32 4294901760, %v599_v35  ;;  %2010 = vmatprep.mubr.f32.mxu0 %v618_v32  ;;  %v610_v51 = vand.u32 4294901760, %v609_v40  ;;  %2106 = vmatpush3.bf16.msra.mxu0 %v2103_v38  ;;  %v620_v52 = vand.u32 4294901760, %v619_v42  ;;  %v639_v53 = vsub.f32 %v2548_v34, %v638_v43  ;;  %v476_v40 = vld [vmem:[%s2489_s11 + $0x70] sm:$0xff] }
  0x57   : > { %v630_v56 = vand.u32 4294901760, %v629_v46  ;;  %2108 = vmatprep.subr.bf16.mxu0 %v2508_v14  ;;  %v648_v2 = vand.u32 4294901760, %v2566_v57  ;;  %v2579_v3 = vsub.f32 %v500_v54, %v2568_v58  ;;  %v2581_v4 = vand.u32 4294901760, %v503_v63 }
  0x58   : > { %1923 = vmatprep.mubr.f32.mxu1 %v600_v44  ;;  %v640_v62 = vand.u32 4294901760, %v639_v53  ;;  %v2583_v5 = vand.u32 4294901760, %v506_v0  ;;  %v2585_v6 = vand.u32 4294901760, %v509_v1  ;;  %v512_v7 = vsel %vm480_vm0, %v472_v59, 0 }
  0x59   : > { %1924 = vmatmul.mubr.f32.vlgmr.msra.gmra.mrb[0].mxu1 %v610_v51  ;;  %2011 = vmatmul.mubr.f32.gmra.mrb[2].mxu0 %v628_v37  ;;  %v515_v8 = vsel %vm480_vm0, %v473_v60, 0  ;;  %v518_v10 = vsel %vm480_vm0, %v474_v61, 0  ;;  %v658_v11 = vand.u32 4294901760, %v2579_v3  ;;  %v649_v12 = vsub.f32 %v2566_v57, %v648_v2 }
  0x5a   : > { %1926 = vmatprep.mubr.f32.mxu1 %v620_v52  ;;  %2094 = vmatpush3.bf16.msra.mxu1 %v2091_v55  ;;  %v2593_v13 = vsub.f32 %v503_v63, %v2581_v4  ;;  %v2596_v18 = vsub.f32 %v506_v0, %v2583_v5  ;;  %v2599_v22 = vsub.f32 %v509_v1, %v2585_v6  ;;  %v2601_v25 = vand.u32 4294901760, %v512_v7 }
  0x5b   : > { %2013 = vmatprep.mubr.f32.mxu0 %v638_v43  ;;  %v2603_v27 = vand.u32 4294901760, %v515_v8  ;;  %v2605_v28 = vand.u32 4294901760, %v518_v10  ;;  %v650_v31 = vand.u32 4294901760, %v649_v12  ;;  %v659_v33 = vsub.f32 %v2579_v3, %v658_v11 }
  0x5c   : > { %v668_v32 = vand.u32 4294901760, %v2593_v13  ;;  %v678_v35 = vand.u32 4294901760, %v2596_v18  ;;  %v688_v36 = vand.u32 4294901760, %v2599_v22  ;;  %v2613_v37 = vsub.f32 %v512_v7, %v2601_v25 }
  0x5d   : > { %1927 = vmatmul.mubr.f32.gmra.mrb[2].mxu1 %v630_v56  ;;  %2014 = vmatmul.mubr.f32.gmra.mrb[4].mxu0 %v648_v2  ;;  %v2616_v38 = vsub.f32 %v515_v8, %v2603_v27  ;;  %v2619_v39 = vsub.f32 %v518_v10, %v2605_v28  ;;  %v660_v41 = vand.u32 4294901760, %v659_v33  ;;  %v521_v44 = vsel %vm480_vm0, %v475_v30, 0 }
  0x5e   : > { %1929 = vmatprep.mubr.f32.mxu1 %v640_v62  ;;  %2016 = vmatprep.mubr.f32.mxu0 %v658_v11  ;;  %v669_v42 = vsub.f32 %v2593_v13, %v668_v32  ;;  %v679_v43 = vsub.f32 %v2596_v18, %v678_v35  ;;  %v698_v45 = vand.u32 4294901760, %v2613_v37  ;;  %v689_v46 = vsub.f32 %v2599_v22, %v688_v36 }
  0x5f   : > { %v708_v48 = vand.u32 4294901760, %v2616_v38  ;;  %v718_v49 = vand.u32 4294901760, %v2619_v39  ;;  %v2630_v53 = vand.u32 4294901760, %v521_v44  ;;  %v524_v54 = vsel %vm480_vm0, %v476_v40, 0 }
  0x60   : > { %v670_v51 = vand.u32 4294901760, %v669_v42  ;;  %v680_v52 = vand.u32 4294901760, %v679_v43  ;;  %v699_v55 = vsub.f32 %v2613_v37, %v698_v45  ;;  %v2637_v59 = vand.u32 4294901760, %v524_v54  ;;  %v350_v42 = vld [vmem:[%s2728_s7 + $0x38] sm:$0xff]  ;;  %v368_v43 = vld [vmem:[%s2470_s8 + $0x48] sm:$0xff] }
  0x61   : > { %1930 = vmatmul.mubr.f32.gmra.mrb[4].mxu1 %v650_v31  ;;  %2017 = vmatmul.mubr.f32.gmra.mrb[6].mxu0 %v668_v32  ;;  %v2635_v56 = vsub.f32 %v521_v44, %v2630_v53  ;;  %v527_v60 = vsel %vm480_vm0, %v477_v50, 0  ;;  %v2095_v61 = vpack.c.bf16 %v2520_v20, %v2514_v17  ;;  %v690_v62 = vand.u32 4294901760, %v689_v46  ;;  %v349_v46 = vld [vmem:[%s2728_s7 + $0x30] sm:$0xff] }
  0x62   : > { %1932 = vmatprep.mubr.f32.mxu1 %v660_v41  ;;  %2019 = vmatprep.mubr.f32.mxu0 %v678_v35  ;;  %v709_v63 = vsub.f32 %v2616_v38, %v708_v48  ;;  %v2643_v0 = vand.u32 4294901760, %v527_v60  ;;  %v700_v1 = vand.u32 4294901760, %v699_v55  ;;  %v719_v7 = vsub.f32 %v2619_v39, %v718_v49 }
  0x63   : > { %v728_v2 = vand.u32 4294901760, %v2635_v56  ;;  %v2648_v8 = vsub.f32 %v524_v54, %v2637_v59  ;;  %2096 = vmatprep.subr.bf16.mxu1 %v2095_v61  ;;  %vm384_vm9 = vcmp.ne.f32.partialorder %v368_v43, %v368_v43 }
  0x64   : > { %v2651_v10 = vsub.f32 %v527_v60, %v2643_v0  ;;  %v710_v20 = vand.u32 4294901760, %v709_v63  ;;  %v720_v30 = vand.u32 4294901760, %v719_v7  ;;  %v351_v63 = vld [vmem:[%s2728_s7 + $0x40] sm:$0xff]  ;;  %v370_v7 = vld [vmem:[%s2470_s8 + $0x58] sm:$0xff] }
  0x65   : > { %1933 = vmatmul.mubr.f32.gmra.mrb[6].mxu1 %v670_v51  ;;  %2020 = vmatmul.mubr.f32.gmra.mrb[8].mxu0 %v688_v36  ;;  %v738_v17 = vand.u32 4294901760, %v2648_v8  ;;  %v729_v11 = vsub.f32 %v2635_v56, %v728_v2  ;;  %vm386_vm11 = vcmp.ne.f32.partialorder %v370_v7, %v370_v7 }
  0x66   : > { %1935 = vmatprep.mubr.f32.mxu1 %v680_v52  ;;  %2022 = vmatprep.mubr.f32.mxu0 %v698_v45  ;;  %v748_v12 = vand.u32 4294901760, %v2651_v10 }
  0x67   : > { %v739_v31 = vsub.f32 %v2648_v8, %v738_v17  ;;  %v730_v32 = vand.u32 4294901760, %v729_v11  ;;  %v369_v11 = vld [vmem:[%s2470_s8 + $0x50] sm:$0xff] }
  0x68   : > { %v749_v33 = vsub.f32 %v2651_v10, %v748_v12  ;;  %vm385_vm12 = vcmp.ne.f32.partialorder %v369_v11, %v369_v11 }
  0x69   : > { %1936 = vmatmul.mubr.f32.gmra.mrb[8].mxu1 %v690_v62  ;;  %2023 = vmatmul.mubr.f32.gmra.mrb[10].mxu0 %v708_v48  ;;  %v740_v35 = vand.u32 4294901760, %v739_v31  ;;  %v367_v48 = vld [vmem:[%s2470_s8 + $0x40] sm:$0xff] }
  0x6a   : > { %1938 = vmatprep.mubr.f32.mxu1 %v700_v1  ;;  %2025 = vmatprep.mubr.f32.mxu0 %v718_v49  ;;  %v750_v36 = vand.u32 4294901760, %v749_v33  ;;  %vm383_vm10 = vcmp.ne.f32.partialorder %v367_v48, %v367_v48 }
  0x6d   : > { %1939 = vmatmul.mubr.f32.gmra.mrb[10].mxu1 %v710_v20  ;;  %2026 = vmatmul.mubr.f32.gmra.mrb[12].mxu0 %v728_v2 }
  0x6e   : > { %1941 = vmatprep.mubr.f32.mxu1 %v720_v30  ;;  %2028 = vmatprep.mubr.f32.mxu0 %v738_v17 }
  0x71   : > { %1942 = vmatmul.mubr.f32.gmra.mrb[12].mxu1 %v730_v32  ;;  %2029 = vmatmul.mubr.f32.gmra.mrb[14].mxu0 %v748_v12 }
  0x72   : > { %1944 = vmatprep.mubr.f32.mxu1 %v740_v35  ;;  %2035 = vmatprep.mubr.f32.mxu0 %v2502_v9  ;;  %v399_v35 = vsel %vm383_vm10, %v351_v63, %v367_v48 }
  0x75   : > { %1945 = vmatmul.mubr.f32.gmra.mrb[14].mxu1 %v750_v36  ;;  %2036 = vmatmul.mubr.f32.vlgmr.msra.gmra.mrb[0].mxu0 %v2510_v15 }
  0x76   : > { %1951 = vmatprep.mubr.f32.mxu1 %v2502_v9  ;;  %2038 = vmatprep.mubr.f32.mxu0 %v2512_v16 }
  0x77   : > { %2110 = vmatpush3.bf16.msra.mxu0 %v2508_v14  ;;  %v359_v14 = vld [vmem:[%s2470_s8] sm:$0xff] }
  0x78   : > { %vm375_vm2 = vcmp.ne.f32.partialorder %v359_v14, %v359_v14 }
  0x79   : > { %1952 = vmatmul.mubr.f32.vlgmr.msra.gmra.mrb[0].mxu1 %v2510_v15  ;;  %2039 = vmatmul.mubr.f32.gmra.mrb[2].mxu0 %v2522_v21 }
  0x7a   : > { %2098 = vmatpush3.bf16.msra.mxu1 %v2095_v61  ;;  %1954 = vmatprep.mubr.f32.mxu1 %v2512_v16 }
  0x7b   : > { %2041 = vmatprep.mubr.f32.mxu0 %v2534_v26 }
  0x7d   : > { %1955 = vmatmul.mubr.f32.gmra.mrb[2].mxu1 %v2522_v21  ;;  %2042 = vmatmul.mubr.f32.gmra.mrb[4].mxu0 %v2558_v47 }
  0x7e   : > { %1957 = vmatprep.mubr.f32.mxu1 %v2534_v26  ;;  %2044 = vmatprep.mubr.f32.mxu0 %v2568_v58 }
  0x81   : > { %1958 = vmatmul.mubr.f32.gmra.mrb[4].mxu1 %v2558_v47  ;;  %2045 = vmatmul.mubr.f32.gmra.mrb[6].mxu0 %v2581_v4 }
  0x82   : > { %1960 = vmatprep.mubr.f32.mxu1 %v2568_v58  ;;  %2047 = vmatprep.mubr.f32.mxu0 %v2583_v5 }
  0x85   : > { %1961 = vmatmul.mubr.f32.gmra.mrb[6].mxu1 %v2581_v4  ;;  %2048 = vmatmul.mubr.f32.gmra.mrb[8].mxu0 %v2585_v6 }
  0x86   : > { %1963 = vmatprep.mubr.f32.mxu1 %v2583_v5  ;;  %2050 = vmatprep.mubr.f32.mxu0 %v2601_v25 }
  0x89   : > { %1964 = vmatmul.mubr.f32.gmra.mrb[8].mxu1 %v2585_v6  ;;  %2051 = vmatmul.mubr.f32.gmra.mrb[10].mxu0 %v2603_v27 }
  0x8a   : > { %1966 = vmatprep.mubr.f32.mxu1 %v2601_v25  ;;  %2053 = vmatprep.mubr.f32.mxu0 %v2605_v28 }
  0x8d   : > { %1967 = vmatmul.mubr.f32.gmra.mrb[10].mxu1 %v2603_v27  ;;  %2054 = vmatmul.mubr.f32.gmra.mrb[12].mxu0 %v2630_v53 }
  0x8e   : > { %1969 = vmatprep.mubr.f32.mxu1 %v2605_v28  ;;  %2056 = vmatprep.mubr.f32.mxu0 %v2637_v59 }
  0x91   : > { %1970 = vmatmul.mubr.f32.gmra.mrb[12].mxu1 %v2630_v53  ;;  %2057 = vmatmul.mubr.f32.gmra.mrb[14].mxu0 %v2643_v0 }
  0x92   : > { %1972 = vmatprep.mubr.f32.mxu1 %v2637_v59  ;;  %2063 = vmatprep.mubr.f32.mxu0 %v2502_v9  ;;  %v360_v9 = vld [vmem:[%s2470_s8 + $0x8] sm:$0xff] }
  0x93   : > { %vm376_vm1 = vcmp.ne.f32.partialorder %v360_v9, %v360_v9 }
  0x95   : > { %1973 = vmatmul.mubr.f32.gmra.mrb[14].mxu1 %v2643_v0  ;;  %2064 = vmatmul.mubr.f32.vlgmr.msra.gmra.mrb[0].mxu0 %v2510_v15  ;;  %v344_v15 = vld [vmem:[%s2728_s7 + $0x8] sm:$0xff] }
  0x96   : > { %1979 = vmatprep.mubr.f32.mxu1 %v2518_v19  ;;  %2066 = vmatprep.mubr.f32.mxu0 %v2512_v16  ;;  %v362_v16 = vld [vmem:[%s2470_s8 + $0x18] sm:$0xff]  ;;  %v361_v19 = vld [vmem:[%s2470_s8 + $0x10] sm:$0xff] }
  0x97   : > { %vm378_vm3 = vcmp.ne.f32.partialorder %v362_v16, %v362_v16  ;;  %vm377_vm4 = vcmp.ne.f32.partialorder %v361_v19, %v361_v19 }
  0x99   : > { %1980 = vmatmul.mubr.f32.vlgmr.msra.gmra.mrb[0].mxu1 %v2528_v23  ;;  %2067 = vmatmul.mubr.f32.gmra.mrb[2].mxu0 %v2522_v21  ;;  %v343_v21 = vld [vmem:[%s2728_s7] sm:$0xff]  ;;  %v392_v23 = vsel %vm376_vm1, %v344_v15, %v360_v9 }
  0x9a   : > { %1982 = vmatprep.mubr.f32.mxu1 %v2531_v24  ;;  %2069 = vmatprep.mubr.f32.mxu0 %v2534_v26  ;;  %v346_v24 = vld [vmem:[%s2728_s7 + $0x18] sm:$0xff]  ;;  %v345_v26 = vld [vmem:[%s2728_s7 + $0x10] sm:$0xff] }
  0x9d   : > { %1983 = vmatmul.mubr.f32.gmra.mrb[2].mxu1 %v2541_v29  ;;  %2070 = vmatmul.mubr.f32.gmra.mrb[4].mxu0 %v2558_v47  ;;  %v391_v29 = vsel %vm375_vm2, %v343_v21, %v359_v14  ;;  %v408_v47 = vsub.f32 %v344_v15, %v392_v23  ;;  %v354_v15 = vld [vmem:[%s2728_s7 + $0x58] sm:$0xff]  ;;  %v372_v23 = vld [vmem:[%s2470_s8 + $0x68] sm:$0xff] }
  0x9e   : > { %1985 = vmatprep.mubr.f32.mxu1 %v2548_v34  ;;  %2072 = vmatprep.mubr.f32.mxu0 %v2568_v58  ;;  %v364_v34 = vld [vmem:[%s2470_s8 + $0x28] sm:$0xff]  ;;  %v393_v58 = vsel %vm377_vm4, %v345_v26, %v361_v19  ;;  %vm388_vm13 = vcmp.ne.f32.partialorder %v372_v23, %v372_v23 }
  0x9f   : > { %vm380_vm5 = vcmp.ne.f32.partialorder %v364_v34, %v364_v34 }
  0xa1   : > { %1986 = vmatmul.mubr.f32.gmra.mrb[4].mxu1 %v2566_v57  ;;  %2073 = vmatmul.mubr.f32.gmra.mrb[6].mxu0 %v2581_v4  ;;  %v394_v57 = vsel %vm378_vm3, %v346_v24, %v362_v16  ;;  %v2743_v4 = vld [vmem:[%s2871_s2] ss:$0 sm:$0xff] }
  0xa2   : > { %1988 = vmatprep.mubr.f32.mxu1 %v2579_v3  ;;  %2075 = vmatprep.mubr.f32.mxu0 %v2583_v5  ;;  %v363_v3 = vld [vmem:[%s2470_s8 + $0x20] sm:$0xff]  ;;  %v407_v5 = vsub.f32 %v343_v21, %v391_v29  ;;  %v353_v21 = vld [vmem:[%s2728_s7 + $0x50] sm:$0xff] }
  0xa3   : > { %vm379_vm6 = vcmp.ne.f32.partialorder %v363_v3, %v363_v3 }
  0xa5   : > { %1989 = vmatmul.mubr.f32.gmra.mrb[6].mxu1 %v2593_v13  ;;  %2076 = vmatmul.mubr.f32.gmra.mrb[8].mxu0 %v2585_v6  ;;  %v348_v6 = vld [vmem:[%s2728_s7 + $0x28] sm:$0xff]  ;;  %v410_v13 = vsub.f32 %v346_v24, %v394_v57 }
  0xa6   : > { %1991 = vmatprep.mubr.f32.mxu1 %v2596_v18  ;;  %2078 = vmatprep.mubr.f32.mxu0 %v2601_v25  ;;  %v409_v18 = vsub.f32 %v345_v26, %v393_v58  ;;  %v366_v25 = vld [vmem:[%s2470_s8 + $0x38] sm:$0xff] }
  0xa7   : > { %vm382_vm7 = vcmp.ne.f32.partialorder %v366_v25, %v366_v25  ;;  %v433_v44 = vmul.f32 %v2743_v4, %v410_v13  ;;  %v402_v13 = vsel %vm386_vm11, %v354_v15, %v370_v7 }
  0xa8   : > { %v432_v45 = vmul.f32 %v2743_v4, %v409_v18  ;;  %v398_v55 = vsel %vm382_vm7, %v350_v42, %v366_v25 }
  0xa9   : > { %1992 = vmatmul.mubr.f32.gmra.mrb[8].mxu1 %v2599_v22  ;;  %2079 = vmatmul.mubr.f32.gmra.mrb[10].mxu0 %v2603_v27  ;;  %v347_v22 = vld [vmem:[%s2728_s7 + $0x20] sm:$0xff]  ;;  %v431_v27 = vmul.f32 %v2743_v4, %v408_v47  ;;  %v449_v1 = vand.u32 2147483647, %v433_v44  ;;  %v414_v17 = vsub.f32 %v350_v42, %v398_v55  ;;  %v418_v44 = vsub.f32 %v354_v15, %v402_v13 }
  0xaa   : > { %1994 = vmatprep.mubr.f32.mxu1 %v2613_v37  ;;  %2081 = vmatprep.mubr.f32.mxu0 %v2605_v28  ;;  %v365_v28 = vld [vmem:[%s2470_s8 + $0x30] sm:$0xff]  ;;  %v395_v41 = vsel %vm379_vm6, %v347_v22, %v363_v3  ;;  %v448_v2 = vand.u32 2147483647, %v432_v45  ;;  %v371_v47 = vld [vmem:[%s2470_s8 + $0x60] sm:$0xff] }
  0xab   : > { %vm381_vm8 = vcmp.ne.f32.partialorder %v365_v28, %v365_v28  ;;  %v447_v49 = vand.u32 2147483647, %v431_v27  ;;  %v411_v54 = vsub.f32 %v347_v22, %v395_v41  ;;  %v437_v29 = vmul.f32 %v2743_v4, %v414_v17  ;;  %v373_v45 = vld [vmem:[%s2470_s8 + $0x70] sm:$0xff] }
  0xac   : > { %v397_v62 = vsel %vm381_vm8, %v349_v46, %v365_v28  ;;  %v401_v27 = vsel %vm385_vm12, %v353_v21, %v369_v11  ;;  %v356_v28 = vld [vmem:[%s2728_s7 + $0x68] sm:$0xff]  ;;  %vm387_vm14 = vcmp.ne.f32.partialorder %v371_v47, %v371_v47  ;;  %vm389_vm0 = vcmp.ne.f32.partialorder %v373_v45, %v373_v45 }
  0xad   : > { %1995 = vmatmul.mubr.f32.gmra.mrb[10].mxu1 %v2616_v38  ;;  %2082 = vmatmul.mubr.f32.gmra.mrb[12].mxu0 %v2630_v53  ;;  %v430_v38 = vmul.f32 %v2743_v4, %v407_v5  ;;  %v434_v32 = vmul.f32 %v2743_v4, %v411_v54  ;;  %v413_v33 = vsub.f32 %v349_v46, %v397_v62  ;;  %v453_v42 = vand.u32 2147483647, %v437_v29  ;;  %v357_v62 = vld [vmem:[%s2728_s7 + $0x70] sm:$0xff] }
  0xae   : > { %1997 = vmatprep.mubr.f32.mxu1 %v2619_v39  ;;  %2084 = vmatprep.mubr.f32.mxu0 %v2637_v59  ;;  %v396_v39 = vsel %vm380_vm5, %v348_v6, %v364_v34  ;;  %v415_v34 = vsub.f32 %v351_v63, %v399_v35 }
  0xaf   : > { %v412_v50 = vsub.f32 %v348_v6, %v396_v39  ;;  %v446_v53 = vand.u32 2147483647, %v430_v38  ;;  %v450_v5 = vand.u32 2147483647, %v434_v32  ;;  %v436_v6 = vmul.f32 %v2743_v4, %v413_v33  ;;  %v355_v39 = vld [vmem:[%s2728_s7 + $0x60] sm:$0xff] }
  0xb0   : > { %v405_v32 = vsel %vm389_vm0, %v357_v62, %v373_v45 }
  0xb1   : > { %1998 = vmatmul.mubr.f32.gmra.mrb[12].mxu1 %v2635_v56  ;;  %2085 = vmatmul.mubr.f32.gmra.mrb[14].mxu0 %v2643_v0  ;;  %v352_v56 = vld [vmem:[%s2728_s7 + $0x48] sm:$0xff] }
  0xb2   : > { %2000 = vmatprep.mubr.f32.mxu1 %v2648_v8  ;;  %v400_v20 = vsel %vm384_vm9, %v352_v56, %v368_v43  ;;  %v438_v43 = vmul.f32 %v2743_v4, %v415_v34 }
  0xb3   : > { %v416_v19 = vsub.f32 %v352_v56, %v400_v20  ;;  %v403_v56 = vsel %vm387_vm14, %v355_v39, %v371_v47 }
  0xb4   : > { %v419_v20 = vsub.f32 %v355_v39, %v403_v56 }
  0xb5   : > { %2001 = vmatmul.mubr.f32.gmra.mrb[14].mxu1 %v2651_v10  ;;  %v435_v10 = vmul.f32 %v2743_v4, %v412_v50  ;;  %v439_v38 = vmul.f32 %v2743_v4, %v416_v19  ;;  %v452_v50 = vand.u32 2147483647, %v436_v6 }
  0xb7   : > { %v451_v26 = vand.u32 2147483647, %v435_v10 }
 0x168   : > { %v2065_v37 = vpop.f32.mrb[0].mxu0 }
 0x169   : > { %v1539_v40 = vpop.f32.mrb[1].mxu0 }
 0x16c   : > { %v1981_v51 = vpop.f32.mrb[0].mxu1  ;;  %v2068_v52 = vpop.f32.mrb[2].mxu0 }
 0x16d   : > { %v2111_v59 = vadd.f32 %v2065_v37, %v1981_v51  ;;  %v999_v60 = vpop.f32.mrb[1].mxu1  ;;  %v1551_v61 = vpop.f32.mrb[3].mxu0  ;;  %v417_v51 = vsub.f32 %v353_v21, %v401_v27 }
 0x16e   : > { %v2112_v0 = vadd.f32 %v1539_v40, %v999_v60  ;;  %v374_v40 = vld [vmem:[%s2470_s8 + $0x78] sm:$0xff]  ;;  %s1674_s8 = ssub.s32 (%p2410_p9), 66, %s2477_s10 }
 0x16f   : > { %v1634_v8 = vmul.f32 %v2111_v59, %v447_v49  ;;  %v358_v59 = vld [vmem:[%s2728_s7 + $0x78] sm:$0xff]  ;;  %vm390_vm15 = vcmp.ne.f32.partialorder %v374_v40, %v374_v40  ;;  %v440_v17 = vmul.f32 %v2743_v4, %v417_v51  ;;  %p1675_p6 = scmp.lt.s32.totalorder (%p2410_p9), %s1674_s8, 16 }
 0x170   : > { %v1633_v12 = vmul.f32 %v2112_v0, %v446_v53  ;;  %v1984_v30 = vpop.f32.mrb[2].mxu1  ;;  %v2071_v31 = vpop.f32.mrb[4].mxu0  ;;  %v454_v0 = vand.u32 2147483647, %v438_v43  ;;  %v406_v11 = vsel %vm390_vm15, %v358_v59, %v374_v40 }
 0x171   : > { %1650 = vst [vmem:[%s2765_s23 + $0x8] sm:$0xff] %v1634_v8  ;;  %v2113_v36 = vadd.f32 %v2068_v52, %v1984_v30  ;;  %v1013_v9 = vpop.f32.mrb[3].mxu1  ;;  %v1563_v14 = vpop.f32.mrb[5].mxu0  ;;  %v404_v52 = vsel %vm388_vm13, %v356_v28, %v372_v23  ;;  %v456_v21 = vand.u32 2147483647, %v440_v17  ;;  %v442_v23 = vmul.f32 %v2743_v4, %v419_v20 }
 0x172   : > { %1649 = vst [vmem:[%s2765_s23] sm:$0xff] %v1633_v12  ;;  %v2114_v16 = vadd.f32 %v1551_v61, %v1013_v9  ;;  %v455_v61 = vand.u32 2147483647, %v439_v38 }
 0x173   : > { %v1636_v24 = vmul.f32 %v2113_v36, %v449_v1  ;;  %v441_v1 = vmul.f32 %v2743_v4, %v418_v44 }
 0x174   : > { %v1635_v57 = vmul.f32 %v2114_v16, %v448_v2  ;;  %v1987_v58 = vpop.f32.mrb[4].mxu1  ;;  %v2074_v3 = vpop.f32.mrb[6].mxu0  ;;  %v420_v2 = vsub.f32 %v356_v28, %v404_v52 }
 0x175   : > { %1652 = vst [vmem:[%s2765_s23 + $0x18] sm:$0xff] %v1636_v24  ;;  %v2115_v18 = vadd.f32 %v2071_v31, %v1987_v58  ;;  %v1027_v22 = vpop.f32.mrb[5].mxu1  ;;  %v1575_v25 = vpop.f32.mrb[7].mxu0  ;;  %v457_v36 = vand.u32 2147483647, %v441_v1  ;;  %v421_v24 = vsub.f32 %v357_v62, %v405_v32 }
 0x176   : > { %1651 = vst [vmem:[%s2765_s23 + $0x10] sm:$0xff] %v1635_v57  ;;  %v2116_v37 = vadd.f32 %v1563_v14, %v1027_v22  ;;  %v443_v9 = vmul.f32 %v2743_v4, %v420_v2  ;;  %v422_v14 = vsub.f32 %v358_v59, %v406_v11 }
 0x177   : > { %v1638_v41 = vmul.f32 %v2115_v18, %v451_v26  ;;  %v458_v18 = vand.u32 2147483647, %v442_v23  ;;  %v444_v22 = vmul.f32 %v2743_v4, %v421_v24 }
 0x178   : > { %v1637_v46 = vmul.f32 %v2116_v37, %v450_v5  ;;  %v1990_v48 = vpop.f32.mrb[6].mxu1  ;;  %v2077_v49 = vpop.f32.mrb[8].mxu0  ;;  %v459_v58 = vand.u32 2147483647, %v443_v9 }
 0x179   : > { %1654 = vst [vmem:[%s2765_s23 + $0x28] sm:$0xff] %v1638_v41  ;;  %v2117_v53 = vadd.f32 %v2074_v3, %v1990_v48  ;;  %v1041_v54 = vpop.f32.mrb[7].mxu1  ;;  %v1587_v55 = vpop.f32.mrb[9].mxu0  ;;  %v445_v3 = vmul.f32 %v2743_v4, %v422_v14 }
 0x17a   : > { %1653 = vst [vmem:[%s2765_s23 + $0x20] sm:$0xff] %v1637_v46  ;;  %v2118_v60 = vadd.f32 %v1575_v25, %v1041_v54 }
 0x17b   : > { %v1640_v63 = vmul.f32 %v2117_v53, %v453_v42  ;;  %v461_v39 = vand.u32 2147483647, %v445_v3  ;;  %v460_v42 = vand.u32 2147483647, %v444_v22 }
 0x17c   : > { %v1639_v7 = vmul.f32 %v2118_v60, %v452_v50  ;;  %v1993_v8 = vpop.f32.mrb[8].mxu1  ;;  %v2080_v10 = vpop.f32.mrb[10].mxu0 }
 0x17d   : > { %1656 = vst [vmem:[%s2765_s23 + $0x38] sm:$0xff] %v1640_v63  ;;  %v2119_v12 = vadd.f32 %v2077_v49, %v1993_v8  ;;  %v1055_v30 = vpop.f32.mrb[9].mxu1  ;;  %v1599_v31 = vpop.f32.mrb[11].mxu0 }
 0x17e   : > { %1655 = vst [vmem:[%s2765_s23 + $0x30] sm:$0xff] %v1639_v7  ;;  %v2120_v33 = vadd.f32 %v1587_v55, %v1055_v30 }
 0x17f   : > { %v1642_v35 = vmul.f32 %v2119_v12, %v455_v61 }
 0x180   : > { %v1641_v15 = vmul.f32 %v2120_v33, %v454_v0  ;;  %v1996_v16 = vpop.f32.mrb[10].mxu1  ;;  %v2083_v19 = vpop.f32.mrb[12].mxu0 }
 0x181   : > { %1658 = vst [vmem:[%s2765_s23 + $0x48] sm:$0xff] %v1642_v35  ;;  %v2121_v26 = vadd.f32 %v2080_v10, %v1996_v16  ;;  %v1069_v29 = vpop.f32.mrb[11].mxu1  ;;  %v1611_v34 = vpop.f32.mrb[13].mxu0 }
 0x182   : > { %1657 = vst [vmem:[%s2765_s23 + $0x40] sm:$0xff] %v1641_v15  ;;  %v2122_v47 = vadd.f32 %v1599_v31, %v1069_v29 }
 0x183   : > { %v1644_v57 = vmul.f32 %v2121_v26, %v457_v36 }
 0x184   : > { %v1643_v5 = vmul.f32 %v2122_v47, %v456_v21  ;;  %v1999_v6 = vpop.f32.mrb[12].mxu1  ;;  %v2086_v13 = vpop.f32.mrb[14].mxu0 }
 0x185   : > { %1660 = vst [vmem:[%s2765_s23 + $0x58] sm:$0xff] %v1644_v57  ;;  %v2123_v25 = vadd.f32 %v2083_v19, %v1999_v6  ;;  %v1083_v27 = vpop.f32.mrb[13].mxu1  ;;  %v1623_v28 = vpop.f32.mrb[15].mxu0 }
 0x186   : > { %1659 = vst [vmem:[%s2765_s23 + $0x50] sm:$0xff] %v1643_v5  ;;  %v2124_v37 = vadd.f32 %v1611_v34, %v1083_v27 }
 0x187   : > { %v1646_v38 = vmul.f32 %v2123_v25, %v459_v58 }
 0x188   : > { %v1645_v40 = vmul.f32 %v2124_v37, %v458_v18  ;;  %v2002_v41 = vpop.f32.mrb[14].mxu1  ;;  %1672 = sbr.rel (!%p2410_p9) target bundleno = 427 (0x1ab), region = 48 }
 0x189   : > { %1662 = vst [vmem:[%s2765_s23 + $0x68] sm:$0xff] %v1646_v38  ;;  %v2125_v43 = vadd.f32 %v2086_v13, %v2002_v41  ;;  %v1097_v44 = vpop.f32.mrb[15].mxu1 }
 0x18a   : > { %1661 = vst [vmem:[%s2765_s23 + $0x60] sm:$0xff] %v1645_v40  ;;  %v2126_v45 = vadd.f32 %v1623_v28, %v1097_v44 }
 0x18b   : > { %v1648_v4 = vmul.f32 %v2125_v43, %v461_v39 }
 0x18c   : > { %v1647_v46 = vmul.f32 %v2126_v45, %v460_v42 }
 0x18d   : > { %1664 = vst [vmem:[%s2765_s23 + $0x78] sm:$0xff] %v1648_v4 }
 0x18e   : > { %1663 = vst [vmem:[%s2765_s23 + $0x70] sm:$0xff] %v1647_v46 }
 0x18f   : > { %s2886_s8 = smov (!%p1675_p6, %s1674_s8), 16 }
 0x190   : > { %s2811_s9 = sshll.u32 %s2886_s8, 7 }
 0x191   : > { %s1679_s11 = ssub.s32 2048, %s2811_s9 }
 0x192   : > { %1680 = vsyncadd %s1666_s6, %s1679_s11  ;;  %p1803_p13 = scmp.ne.s32.totalorder %s2811_s9, 0  ;;  %s1810_s28 = sshll.u32 %s2387_s22, 11 }
 0x193   : > { %s2821_s14 = scalar_lea.hbm %s2874_s5, %s1810_s28  ;;  %s1685_s10 = sshll.u32 %s2765_s23, 4  ;;  %s2824_s10 = int_to_ptr.vmem [resolvable:$true] %s1685_s10 }
 0x194   : > { %s2262_s15 = scalar_lea.vmem %s2824_s10, %s2811_s9  ;;  %s2333_s16 = smov [#allocation5]  }
 0x195   : > { %p2263_p9 = scmp.ne.s32.totalorder %s2824_s10, %s2262_s15  ;;  %s2266_s25 = sshll.u32 %s2333_s16, 4  ;;  %s2267_s25 = int_to_ptr.vmem [resolvable:$false] %s2266_s25 }
 0x196   : > { %s2268_s22 = scalar_lea.vmem %s2267_s25, 4096  ;;  %p2269_p0 = scmp.lt.s32.totalorder %s2824_s10, %s2267_s25 }
 0x197   : > { %p2264_p11 = pnand %p2263_p9, %p1803_p13  ;;  %p2270_p1 = scmp.lt.s32.totalorder %s2268_s22, %s2262_s15 }
 0x199   : > { %p2265_p12 = pneg %p2264_p11  ;;  %p2271_p3 = por %p2270_p1, %p2269_p0 }
 0x19b   : > { %p2272_p4 = pnand %p2271_p3, %p2265_p12 }
 0x19d   : > { %2275 = shalt.err (!%p2272_p4)
}
 0x19e   : > { %s2276_s7 = scalar_lea.hbm %s2821_s14, %s2811_s9  ;;  %s2280_s23 = scalar_lea.hbm %s2874_s5, 8448 }
 0x19f   : > { %p2277_p5 = scmp.ne.s32.totalorder %s2821_s14, %s2276_s7  ;;  %p2281_p8 = scmp.lt.u32.totalorder %s2821_s14, %s2874_s5 }
 0x1a0   : > { %p2282_p10 = scmp.lt.u32.totalorder %s2280_s23, %s2276_s7  ;;  %p2284_p9 = scmp.lt.u32.totalorder %s2276_s7, %s2821_s14 }
 0x1a1   : > { %p2278_p2 = pnand %p2277_p5, %p1803_p13 }
 0x1a2   : > { %p2283_p6 = por %p2282_p10, %p2281_p8 }
 0x1a3   : > { %p2279_p7 = pneg %p2278_p2 }
 0x1a4   : > { %p2285_p11 = por %p2284_p9, %p2283_p6 }
 0x1a6   : > { %p2286_p12 = pnand %p2285_p11, %p2279_p7 }
 0x1a8   : > { %2289 = shalt.err (!%p2286_p12)
}
 0x1a9   : > { %s2334_s28 = smov 128   ;;  %s2335_s29 = smov 8  }
 0x1aa   : > { %1691 = dma.vmem_to_hbm [thread:$0]  (%p1803_p13), %s2824_s10, %s2811_s9, %s2821_s14, %s1666_s6, %s2334_s28, %s2334_s28, %s2335_s29  }
 0x1ab PF: > { %p2197_p0 = scmp.ge.s32.totalorder %s2328_s21, 2  ;;  %s1700_s13 = sand.u32 1, %s2316_s18  }
 0x1ac   : > { %p2878_p1 = scmp.ne.s32.totalorder %s2877_s30, 0  ;;  %s1701_s15 = scalar_lea.sflag [#allocation4], %s1700_s13 }
 0x1ae   : > { %p2194_p3 = pnand %p2197_p0, %p2878_p1 }
 0x1b0   : > { %2311 = dma.done.wait (!%p2194_p3), %s1701_s15, 2048  }
 0x1b1   : > { %2313 = vsyncadd (!%p2194_p3), %s1701_s15, 4294965248  ;;  %p18_p4 = scmp.ge.s32.totalorder %s2391_s24, 7   ;;  %s2879_s18 = smov %s2320_s19 }
 0x1b2   : > { %s2880_s19 = smov %s2324_s20  ;;  %s2881_s20 = smov %s2403_s27 }
 0x1b3   : > { %s2882_s21 = smov %s2391_s24  ;;  %20 = sbr.rel (!%p18_p4) target bundleno = 5 (0x5), region = 91 }
 0x1ba   :  { %1706 = vsyncpa [#allocation3], 1 }
 0x1bb   :  { %1708 = vsyncpa [#allocation3 + $0x1], 1 }
 0x1bc   :  { %1709 = vsyncpa [#allocation4], 1 }
 0x1bd   :  { %1711 = vsyncpa [#allocation4 + $0x1], 1 }

</bundles_post_ra>
